<compile_context>
chip_gen: v7x
topology: tpu7x:2x2x1
jax: 0.10.0
libtpu: 0.0.40
codegen_flags: <defaults>
</compile_context>

<pallas_src>
import functools

import jax
import jax.numpy as jnp
from jax.experimental import pallas as pl
from jax.experimental.pallas import tpu as pltpu


# --------------------------------------------------------------------------- #
# Kernels
# --------------------------------------------------------------------------- #
def skip_mlp_kernel_resident(x_ref, w_ref, b_ref, o_ref, *, negative_slope):
    """Fast path: W fully resident in VMEM, 1-D grid over row tiles.

    x_ref: (TM, D)   row tile (also supplies the skip term, since D_in == D_out)
    w_ref: (D, D)    resident weight (constant index_map -> DMA'd once)
    b_ref: (1, D)    bias
    o_ref: (TM, D)
    """
    x = x_ref[...]
    z = jnp.dot(x, w_ref[...], preferred_element_type=jnp.float32)
    z = z + b_ref[...].astype(jnp.float32)
    act = jnp.where(z >= 0, z, jnp.float32(negative_slope) * z)
    o_ref[...] = (x.astype(jnp.float32) + act).astype(o_ref.dtype)


def skip_mlp_kernel_tiled(x_ref, xs_ref, w_ref, b_ref, o_ref, acc_ref,
                          *, negative_slope):
    """General path: (rows, out-cols, K) grid with a f32 accumulator.

    x_ref:  (TM, TK)  matmul operand tile
    xs_ref: (TM, TN)  skip slice (block index constant across k -> fetched once
                      per (i, j), no re-DMA over the reduction axis)
    w_ref:  (TK, TN)  weight tile
    b_ref:  (1, TN)   bias slice
    o_ref:  (TM, TN)
    acc_ref:(TM, TN)  f32 VMEM accumulator scratch
    """
    k = pl.program_id(2)

    @pl.when(k == 0)
    def _():
        acc_ref[...] = jnp.zeros_like(acc_ref)

    acc_ref[...] += jnp.dot(x_ref[...], w_ref[...],
                            preferred_element_type=jnp.float32)

    @pl.when(k == pl.num_programs(2) - 1)
    def _():
        z = acc_ref[...] + b_ref[...].astype(jnp.float32)
        act = jnp.where(z >= 0, z, jnp.float32(negative_slope) * z)
        o_ref[...] = (xs_ref[...].astype(jnp.float32) + act).astype(o_ref.dtype)


# --------------------------------------------------------------------------- #
# Tiling / wrapper
# --------------------------------------------------------------------------- #
def _round_down(v, m):
    return max(m, (v // m) * m)


def _vmem_capacity_bytes():
    """Physical per-core VMEM (generation-aware); conservative fallback."""
    try:
        cap = int(pltpu.get_tpu_info().vmem_capacity_bytes)
        if cap > 0:
            return cap
    except Exception:
        pass
    return 64 * 1024 * 1024   # v7x per-TensorCore size (smallest generation)


def skip_mlp_block(x, w, b, negative_slope, *, block_m=None, block_n=None,
                   block_k=None, vmem_limit_bytes=None):
    """x: (M, D), w: (D, D) in (in, out) layout (== PyTorch weight.T), b: (D,)."""
    M, D_in = x.shape
    Kw, D_out = w.shape
    assert Kw == D_in
    assert D_in == D_out, "skip connection requires in_features == out_features"
    assert b.shape == (D_out,)

    itemsize = jnp.dtype(x.dtype).itemsize
    sub = 16 if itemsize == 2 else 8      # min sublane multiple (bf16 vs f32)

    if vmem_limit_bytes is None:
        # ~75% of physical VMEM: ~96 MiB on v5e/v6e (128 MiB), ~48 MiB on v7x (64 MiB/TC).
        vmem_limit_bytes = int(0.75 * _vmem_capacity_bytes())
    budget = int(0.8 * vmem_limit_bytes)

    b2 = b.reshape(1, D_out)
    flops = 2 * M * D_in * D_out

    # ---------------- fast path: resident W, 1-D row grid, no duplicate x ----
    def _fast_tm():
        fixed = 2 * itemsize * (D_in * D_out + D_out)       # W + bias (buffered, conservative)
        per_row = 2 * itemsize * (D_in + D_out)              # x tile + out tile (double-buffered)
        if fixed >= budget:
            return None
        cap = (budget - fixed) // per_row
        if cap >= M:
            return M
        if cap < min(M, 256):
            return None                                      # too cramped -> tiled path
        return _round_down(min(int(cap), 1024), 256)          # 256-multiple MXU-friendly tiles

    tm_fast = block_m if block_m is not None else _fast_tm()
    want_fast = (block_k is None
                 and (block_n is None or block_n == D_out)
                 and tm_fast is not None)

    if want_fast:
        tm = min(int(tm_fast), M)
        if tm < M:
            tm = _round_down(tm, sub)
        grid = (pl.cdiv(M, tm),)
        bytes_accessed = int(itemsize * (M * D_in          # x read once
                                         + D_in * D_out    # W read once (resident)
                                         + D_out           # bias
                                         + M * D_out))     # output write
        kernel = functools.partial(skip_mlp_kernel_resident,
                                   negative_slope=float(negative_slope))
        return pl.pallas_call(
            kernel,
            out_shape=jax.ShapeDtypeStruct((M, D_out), x.dtype),
            grid_spec=pltpu.PrefetchScalarGridSpec(
                num_scalar_prefetch=0,
                grid=grid,
                in_specs=[
                    pl.BlockSpec((tm, D_in), lambda i: (i, 0)),      # x rows
                    pl.BlockSpec((D_in, D_out), lambda i: (0, 0)),   # W resident (DMA once)
                    pl.BlockSpec((1, D_out), lambda i: (0, 0)),      # bias
                ],
                out_specs=pl.BlockSpec((tm, D_out), lambda i: (i, 0)),
            ),
            compiler_params=pltpu.CompilerParams(
                dimension_semantics=("parallel",),
                vmem_limit_bytes=vmem_limit_bytes,
            ),
            cost_estimate=pl.CostEstimate(flops=flops, transcendentals=0,
                                          bytes_accessed=bytes_accessed),
        )(x, w, b2)

    # ---------------- general path: (i, j, k) grid with f32 accumulator -------
    # K tile must evenly divide D_in (padded partial reduction tiles would feed
    # unspecified data into valid outputs).
    def _pick_tk():
        if block_k is not None:
            return int(block_k)
        for cand in (512, 384, 256, 128):
            if D_in % cand == 0:
                return cand
        # TODO(synk): handle D_in with no 128-multiple divisor via an in-kernel
        #             K mask instead of falling back to an unsplit reduction.
        return D_in

    tk = _pick_tk()
    tn = int(block_n) if block_n is not None else min(D_out, 512)
    if tn < D_out:
        tn = _round_down(tn, 128)                 # lane-dense output columns
    tm = int(block_m) if block_m is not None else min(M, 512)
    if tm < M:
        tm = _round_down(tm, sub)

    def _footprint(tm_, tn_, tk_):
        db = 2 * itemsize                         # double-buffered streams
        return (db * (tm_ * tk_ + tm_ * tn_ + tk_ * tn_ + tn_ + tm_ * tn_)
                + 4 * tm_ * tn_)                  # + f32 accumulator scratch

    # Shrink the reduction tile first, then rows; keep tn lane-dense / >= 256.
    if block_k is None:
        while (_footprint(tm, tn, tk) > budget and tk > 256
               and D_in % (tk // 2) == 0):
            tk //= 2
    if block_m is None:
        while _footprint(tm, tn, tk) > budget and tm > 256:
            tm = _round_down(tm // 2, sub)
    if block_n is None:
        while _footprint(tm, tn, tk) > budget and tn > 256:
            tn = _round_down(tn // 2, 128)

    grid_i = pl.cdiv(M, tm)
    grid_j = pl.cdiv(D_out, tn)
    grid_k = pl.cdiv(D_in, tk)

    bytes_accessed = int(itemsize * (grid_j * M * D_in       # x re-streamed per column tile
                                     + grid_i * D_in * D_out  # W re-streamed per row tile
                                     + M * D_out              # skip slice (once per (i,j))
                                     + M * D_out))            # output write
    kernel = functools.partial(skip_mlp_kernel_tiled,
                               negative_slope=float(negative_slope))
    return pl.pallas_call(
        kernel,
        out_shape=jax.ShapeDtypeStruct((M, D_out), x.dtype),
        grid_spec=pltpu.PrefetchScalarGridSpec(
            num_scalar_prefetch=0,
            grid=(grid_i, grid_j, grid_k),
            in_specs=[
                pl.BlockSpec((tm, tk), lambda i, j, k: (i, k)),   # x (matmul operand)
                pl.BlockSpec((tm, tn), lambda i, j, k: (i, j)),   # x (skip; const over k)
                pl.BlockSpec((tk, tn), lambda i, j, k: (k, j)),   # W tile
                pl.BlockSpec((1, tn), lambda i, j, k: (0, j)),    # bias slice
            ],
            out_specs=pl.BlockSpec((tm, tn), lambda i, j, k: (i, j)),
            scratch_shapes=[pltpu.VMEM((tm, tn), jnp.float32)],
        ),
        compiler_params=pltpu.CompilerParams(
            # column axis parallel -> on v7x each TensorCore touches only its
            # half of W's columns; reduction axis stays "arbitrary".
            dimension_semantics=("parallel", "parallel", "arbitrary"),
            vmem_limit_bytes=vmem_limit_bytes,
        ),
        cost_estimate=pl.CostEstimate(flops=flops, transcendentals=0,
                                      bytes_accessed=bytes_accessed),
    )(x, x, w, b2)


def skip_mlp_ref(x, w, b, negative_slope):
    z = x @ w + b
    return x + jnp.where(z >= 0, z, negative_slope * z)


# --------------------------------------------------------------------------- #
# Demo / correctness check
# --------------------------------------------------------------------------- #
if __name__ == "__main__":
    key = jax.random.PRNGKey(0)
    k_x, k_w, k_b = jax.random.split(key, 3)

    batch = 128
    features = 256            # in == out (skip), lane-dense
    negative_slope = 0.1

    x = jax.random.normal(k_x, (batch, features), dtype=jnp.float32)
    bound = 1.0 / (features ** 0.5)   # PyTorch nn.Linear-style uniform init
    w = jax.random.uniform(k_w, (features, features), jnp.float32, -bound, bound)
    b = jax.random.uniform(k_b, (features,), jnp.float32, -bound, bound)

    ref = skip_mlp_ref(x, w, b, negative_slope)

    # Fast path: auto tiling -> single resident block (grid = (1,)).
    out_fast = jax.block_until_ready(skip_mlp_block(x, w, b, negative_slope))
    assert out_fast.shape == (batch, features)
    assert jnp.allclose(out_fast, ref, atol=1e-4, rtol=1e-4), "fast path mismatch"

    # General path: explicit (row, col, K) blocks to exercise the accumulator /
    # K-split code used at production sizes (large D on v7x).
    out_tiled = jax.block_until_ready(
        skip_mlp_block(x, w, b, negative_slope,
                       block_m=64, block_n=128, block_k=128))
    assert jnp.allclose(out_tiled, ref, atol=1e-4, rtol=1e-4), "tiled path mismatch"

    print("KERNEL_OK")
</pallas_src>

<mosaic_0001>
module attributes {stable_mosaic.version = 11 : i64} {
  func.func @skip_mlp_kernel_resident(%arg0: i32, %arg1: memref<128x256xf32, #tpu.memory_space<vmem>>, %arg2: memref<256x256xf32, #tpu.memory_space<vmem>>, %arg3: memref<1x256xf32, #tpu.memory_space<vmem>>, %arg4: memref<128x256xf32, #tpu.memory_space<vmem>>) attributes {dimension_semantics = [#tpu.dimension_semantics<parallel>], iteration_bounds = array<i64: 1>, scalar_prefetch = 0 : i64, scratch_operands = 0 : i64, tpu.core_type = #tpu.core_type<tc>, window_params = [{transform_indices = @transform_0, window_bounds = array<i64: 128, 256>}, {pipeline_mode = #tpu.pipeline_mode<synchronous>, transform_indices = @transform_1, window_bounds = array<i64: 256, 256>}, {pipeline_mode = #tpu.pipeline_mode<synchronous>, transform_indices = @transform_2, window_bounds = array<i64: 1, 256>}, {transform_indices = @transform_3, window_bounds = array<i64: 128, 256>}]} {
    %c0 = arith.constant 0 : index
    %c0_0 = arith.constant 0 : index
    %0 = vector.load %arg1[%c0, %c0_0] : memref<128x256xf32, #tpu.memory_space<vmem>>, vector<128x256xf32>
    %c0_1 = arith.constant 0 : index
    %c0_2 = arith.constant 0 : index
    %1 = vector.load %arg2[%c0_1, %c0_2] : memref<256x256xf32, #tpu.memory_space<vmem>>, vector<256x256xf32>
    %cst = arith.constant dense<0.000000e+00> : vector<128x256xf32>
    %2 = tpu.matmul %0, %1, %cst {dimension_numbers = #tpu.dot_dimension_numbers<[1], [0], [0], [1], [0, 0, 1, 1], [], []>} : vector<128x256xf32>, vector<256x256xf32>, vector<128x256xf32> -> vector<128x256xf32>
    %c0_3 = arith.constant 0 : index
    %c0_4 = arith.constant 0 : index
    %3 = vector.load %arg3[%c0_3, %c0_4] : memref<1x256xf32, #tpu.memory_space<vmem>>, vector<1x256xf32>
    %4 = vector.broadcast %3 : vector<1x256xf32> to vector<128x256xf32>
    %5 = arith.addf %2, %4 : vector<128x256xf32>
    %cst_5 = arith.constant 0.000000e+00 : f32
    %6 = vector.broadcast %cst_5 : f32 to vector<128x256xf32>
    %7 = arith.cmpf oge, %5, %6 : vector<128x256xf32>
    %cst_6 = arith.constant 1.000000e-01 : f32
    %8 = vector.broadcast %cst_6 : f32 to vector<128x256xf32>
    %9 = arith.mulf %8, %5 : vector<128x256xf32>
    %10 = arith.select %7, %5, %9 : vector<128x256xi1>, vector<128x256xf32>
    %11 = arith.addf %0, %10 : vector<128x256xf32>
    %c0_7 = arith.constant 0 : index
    %c0_8 = arith.constant 0 : index
    %12 = vector.load %arg4[%c0_7, %c0_8] : memref<128x256xf32, #tpu.memory_space<vmem>>, vector<128x256xf32>
    tpu.vector_store %arg4[%c0_7, %c0_8], %11 {strides = array<i32>} : memref<128x256xf32, #tpu.memory_space<vmem>>, vector<128x256xf32>,
    return
  }
  func.func @transform_0(%arg0: i32) -> (i32, i32) {
    %c0_i32 = arith.constant 0 : i32
    %c0_i32_0 = arith.constant 0 : i32
    return %arg0, %c0_i32 : i32, i32
  }
  func.func @transform_1(%arg0: i32) -> (i32, i32) {
    %c0_i32 = arith.constant 0 : i32
    %c0_i32_0 = arith.constant 0 : i32
    %c0_i32_1 = arith.constant 0 : i32
    return %c0_i32, %c0_i32_0 : i32, i32
  }
  func.func @transform_2(%arg0: i32) -> (i32, i32) {
    %c0_i32 = arith.constant 0 : i32
    %c0_i32_0 = arith.constant 0 : i32
    %c0_i32_1 = arith.constant 0 : i32
    return %c0_i32, %c0_i32_0 : i32, i32
  }
  func.func @transform_3(%arg0: i32) -> (i32, i32) {
    %c0_i32 = arith.constant 0 : i32
    %c0_i32_0 = arith.constant 0 : i32
    return %arg0, %c0_i32 : i32, i32
  }
}

</mosaic_0001>

<bundles_post_ra>
// kernel: tpu_custom_call.1
= control target key start
LH: loop header
LB: loop body
LE: loop exit
PB: predicated region body
PF: predicated region fallthrough
CT: control target
= control target key end

     0   :  { %8 = vsyncpa [#allocation3], 0  ;;  %s900_s0 = inlined_call_operand.hbm [shape: f32[128,256], index: 0, kind: input, shape index: {}]   ;;  %s901_s1 = inlined_call_operand.hbm [shape: f32[256,256], index: 1, kind: input, shape index: {}]   ;;  %s902_s2 = inlined_call_operand.vmem [shape: f32[1,256], index: 2, kind: input, shape index: {}]   ;;  %s903_s3 = inlined_call_operand.hbm [shape: f32[128,256], index: 3, kind: output, shape index: {}]  }
   0x1   :  { %9 = vsyncpa [#allocation6], 0 }
   0x2   :  { %10 = vsyncpa [#allocation4], 0  ;;  %s663_s12 = smov [#allocation2]   ;;  %s591_s16 = scalar_lea.hbm %s900_s0, 4096 }
   0x3   :  { %s16_s13 = sshll.u32 %s663_s12, 4  ;;  %p592_p0 = scmp.ne.s32.totalorder %s900_s0, %s591_s16  ;;  %s17_s13 = int_to_ptr.vmem [resolvable:$true] %s16_s13 }
   0x4   :  { %p595_p1 = scmp.lt.u32.totalorder %s591_s16, %s900_s0 }
   0x6   :  { %p597_p2 = pnand %p595_p1, %p592_p0 }
   0x8   :  { %600 = shalt.err (!%p597_p2)
}
   0x9   :  { %s601_s21 = scalar_lea.vmem %s17_s13, 4096  ;;  %p606_p4 = scmp.lt.s32.totalorder %s17_s13, %s17_s13 }
   0xa   :  { %p602_p3 = scmp.ne.s32.totalorder %s17_s13, %s601_s21  ;;  %p607_p5 = scmp.lt.s32.totalorder %s601_s21, %s601_s21 }
   0xc   :  { %p608_p6 = por %p607_p5, %p606_p4 }
   0xe   :  { %p609_p7 = pnand %p608_p6, %p602_p3 }
  0x10   :  { %612 = shalt.err (!%p609_p7)
}
  0x11   :  { %s664_s22 = smov 256   ;;  %s665_s23 = smov 16  }
  0x12   :  { %22 = dma.hbm_to_vmem [thread:$0]  %s900_s0, 4096, %s17_s13, [#allocation3], %s664_s22, %s664_s22, %s665_s23  }
  0x13   :  { %s666_s26 = smov [#allocation5]   ;;  %s613_s30 = scalar_lea.hbm %s901_s1, 8192 }
  0x14   :  { %s28_s27 = sshll.u32 %s666_s26, 4  ;;  %p614_p8 = scmp.ne.s32.totalorder %s901_s1, %s613_s30  ;;  %s29_s27 = int_to_ptr.vmem [resolvable:$true] %s28_s27 }
  0x15   :  { %p617_p9 = scmp.lt.u32.totalorder %s613_s30, %s901_s1 }
  0x17   :  { %p619_p10 = pnand %p617_p9, %p614_p8 }
  0x19   :  { %622 = shalt.err (!%p619_p10)
}
  0x1a   :  { %s623_s8 = scalar_lea.vmem %s29_s27, 8192  ;;  %p628_p12 = scmp.lt.s32.totalorder %s29_s27, %s29_s27 }
  0x1b   :  { %p624_p11 = scmp.ne.s32.totalorder %s29_s27, %s623_s8  ;;  %p629_p13 = scmp.lt.s32.totalorder %s623_s8, %s623_s8 }
  0x1d   :  { %p630_p0 = por %p629_p13, %p628_p12 }
  0x1f   :  { %p631_p1 = pnand %p630_p0, %p624_p11 }
  0x21   :  { %634 = shalt.err (!%p631_p1)
}
  0x22   :  { %34 = dma.hbm_to_vmem [thread:$0]  %s901_s1, 8192, %s29_s27, [#allocation6], %s664_s22, %s664_s22, %s665_s23  }
  0x23   :  { %657 = dma.done.wait [#allocation3], 4096  }
  0x24   :  { %658 = vsyncadd [#allocation3], 4294963200 }
  0x25   :  { %659 = dma.done.wait [#allocation6], 8192  }
  0x26   :  { %660 = vsyncadd [#allocation6], 4294959104  ;;  %v76_v0 = vld [vmem:[#allocation5 + $0x8] sm:$0xff]  ;;  %v78_v1 = vld [vmem:[#allocation5 + $0x18] sm:$0xff] }
  0x27   :  { %v75_v2 = vld [vmem:[#allocation5] sm:$0xff]  ;;  %v490_v3 = vpack.c.bf16 %v78_v1, %v76_v0  ;;  %v77_v4 = vld [vmem:[#allocation5 + $0x10] sm:$0xff]  ;;  %v80_v5 = vld [vmem:[#allocation5 + $0x28] sm:$0xff] }
  0x28   :  { %v82_v6 = vld [vmem:[#allocation5 + $0x38] sm:$0xff]  ;;  %v492_v7 = vpack.c.bf16 %v77_v4, %v75_v2  ;;  %v79_v9 = vld [vmem:[#allocation5 + $0x20] sm:$0xff]  ;;  %v81_v10 = vld [vmem:[#allocation5 + $0x30] sm:$0xff] }
  0x29   :  { %v494_v8 = vpack.c.bf16 %v82_v6, %v80_v5  ;;  %v84_v11 = vld [vmem:[#allocation5 + $0x48] sm:$0xff]  ;;  %491 = vmatprep.subr.bf16.mxu0 %v490_v3  ;;  %554 = vmatprep.subr.bf16.mxu1 %v490_v3  ;;  %v86_v12 = vld [vmem:[#allocation5 + $0x58] sm:$0xff]  ;;  %v496_v13 = vpack.c.bf16 %v81_v10, %v79_v9  ;;  %v83_v15 = vld [vmem:[#allocation5 + $0x40] sm:$0xff] }
  0x2a   :  { %493 = vmatpush1.bf16.msra.mxu0 %v492_v7  ;;  %570 = vmatpush1.bf16.msra.mxu1 %v492_v7  ;;  %v498_v14 = vpack.c.bf16 %v86_v12, %v84_v11  ;;  %v85_v16 = vld [vmem:[#allocation5 + $0x50] sm:$0xff]  ;;  %v88_v17 = vld [vmem:[#allocation5 + $0x68] sm:$0xff]  ;;  %v90_v18 = vld [vmem:[#allocation5 + $0x78] sm:$0xff] }
  0x2b   :  { %495 = vmatprep.subr.bf16.mxu0 %v494_v8  ;;  %555 = vmatprep.subr.bf16.mxu1 %v494_v8  ;;  %v500_v19 = vpack.c.bf16 %v85_v16, %v83_v15  ;;  %v502_v20 = vpack.c.bf16 %v90_v18, %v88_v17  ;;  %v87_v21 = vld [vmem:[#allocation5 + $0x60] sm:$0xff]  ;;  %v89_v22 = vld [vmem:[#allocation5 + $0x70] sm:$0xff]  ;;  %v92_v23 = vld [vmem:[#allocation5 + $0x88] sm:$0xff] }
  0x2c   :  { %v94_v24 = vld [vmem:[#allocation5 + $0x98] sm:$0xff]  ;;  %v504_v25 = vpack.c.bf16 %v89_v22, %v87_v21  ;;  %v91_v27 = vld [vmem:[#allocation5 + $0x80] sm:$0xff]  ;;  %v93_v28 = vld [vmem:[#allocation5 + $0x90] sm:$0xff] }
  0x2d   :  { %v506_v26 = vpack.c.bf16 %v94_v24, %v92_v23  ;;  %v96_v29 = vld [vmem:[#allocation5 + $0xa8] sm:$0xff]  ;;  %v98_v30 = vld [vmem:[#allocation5 + $0xb8] sm:$0xff]  ;;  %v508_v31 = vpack.c.bf16 %v93_v28, %v91_v27  ;;  %v95_v33 = vld [vmem:[#allocation5 + $0xa0] sm:$0xff] }
  0x2e   :  { %497 = vmatpush1.bf16.msra.mxu0 %v496_v13  ;;  %571 = vmatpush1.bf16.msra.mxu1 %v496_v13  ;;  %v510_v32 = vpack.c.bf16 %v98_v30, %v96_v29  ;;  %v97_v34 = vld [vmem:[#allocation5 + $0xb0] sm:$0xff]  ;;  %v100_v35 = vld [vmem:[#allocation5 + $0xc8] sm:$0xff]  ;;  %v102_v36 = vld [vmem:[#allocation5 + $0xd8] sm:$0xff] }
  0x2f   :  { %499 = vmatprep.subr.bf16.mxu0 %v498_v14  ;;  %556 = vmatprep.subr.bf16.mxu1 %v498_v14  ;;  %v512_v37 = vpack.c.bf16 %v97_v34, %v95_v33  ;;  %v99_v38 = vld [vmem:[#allocation5 + $0xc0] sm:$0xff]  ;;  %v514_v39 = vpack.c.bf16 %v102_v36, %v100_v35  ;;  %v101_v40 = vld [vmem:[#allocation5 + $0xd0] sm:$0xff]  ;;  %v718_v41 = vld [vmem:[#allocation2 + $0x8] sm:$0xff] }
  0x30   :  { %v720_v42 = vld [vmem:[#allocation2 + $0x88] sm:$0xff]  ;;  %v106_v44 = vld [vmem:[#allocation5 + $0xf8] sm:$0xff]  ;;  %215 = vmatprep.mubr.f32.mxu0 %v718_v41  ;;  %v516_v45 = vpack.c.bf16 %v101_v40, %v99_v38  ;;  %v103_v47 = vld [vmem:[#allocation5 + $0xe0] sm:$0xff] }
  0x31   :  { %v104_v43 = vld [vmem:[#allocation5 + $0xe8] sm:$0xff]  ;;  %263 = vmatprep.mubr.f32.mxu1 %v720_v42  ;;  %v105_v48 = vld [vmem:[#allocation5 + $0xf0] sm:$0xff]  ;;  %v110_v50 = vld [vmem:[#allocation5 + $0x118] sm:$0xff] }
  0x32   :  { %501 = vmatpush1.bf16.msra.mxu0 %v500_v19  ;;  %572 = vmatpush1.bf16.msra.mxu1 %v500_v19  ;;  %v518_v46 = vpack.c.bf16 %v106_v44, %v104_v43  ;;  %v108_v49 = vld [vmem:[#allocation5 + $0x108] sm:$0xff]  ;;  %v520_v51 = vpack.c.bf16 %v105_v48, %v103_v47  ;;  %v107_v53 = vld [vmem:[#allocation5 + $0x100] sm:$0xff]  ;;  %v109_v54 = vld [vmem:[#allocation5 + $0x110] sm:$0xff] }
  0x33   :  { %503 = vmatprep.subr.bf16.mxu0 %v502_v20  ;;  %557 = vmatprep.subr.bf16.mxu1 %v502_v20  ;;  %v522_v52 = vpack.c.bf16 %v110_v50, %v108_v49  ;;  %v112_v55 = vld [vmem:[#allocation5 + $0x128] sm:$0xff]  ;;  %v114_v56 = vld [vmem:[#allocation5 + $0x138] sm:$0xff]  ;;  %v524_v57 = vpack.c.bf16 %v109_v54, %v107_v53  ;;  %v111_v59 = vld [vmem:[#allocation5 + $0x120] sm:$0xff] }
  0x34   :  { %v526_v58 = vpack.c.bf16 %v114_v56, %v112_v55  ;;  %v113_v60 = vld [vmem:[#allocation5 + $0x130] sm:$0xff]  ;;  %v116_v61 = vld [vmem:[#allocation5 + $0x148] sm:$0xff]  ;;  %v118_v62 = vld [vmem:[#allocation5 + $0x158] sm:$0xff] }
  0x35   :  { %v528_v63 = vpack.c.bf16 %v113_v60, %v111_v59  ;;  %v530_v0 = vpack.c.bf16 %v118_v62, %v116_v61  ;;  %v115_v1 = vld [vmem:[#allocation5 + $0x140] sm:$0xff]  ;;  %v117_v2 = vld [vmem:[#allocation5 + $0x150] sm:$0xff]  ;;  %v120_v3 = vld [vmem:[#allocation5 + $0x168] sm:$0xff] }
  0x36   :  { %505 = vmatpush1.bf16.msra.mxu0 %v504_v25  ;;  %573 = vmatpush1.bf16.msra.mxu1 %v504_v25  ;;  %v122_v4 = vld [vmem:[#allocation5 + $0x178] sm:$0xff]  ;;  %v532_v5 = vpack.c.bf16 %v117_v2, %v115_v1  ;;  %v119_v7 = vld [vmem:[#allocation5 + $0x160] sm:$0xff]  ;;  %v121_v8 = vld [vmem:[#allocation5 + $0x170] sm:$0xff]  ;;  %v141_v2 = vlaneseq }
  0x37   :  { %507 = vmatprep.subr.bf16.mxu0 %v506_v26  ;;  %558 = vmatprep.subr.bf16.mxu1 %v506_v26  ;;  %v534_v6 = vpack.c.bf16 %v122_v4, %v120_v3  ;;  %v124_v9 = vld [vmem:[#allocation5 + $0x188] sm:$0xff]  ;;  %v126_v10 = vld [vmem:[#allocation5 + $0x198] sm:$0xff]  ;;  %v536_v11 = vpack.c.bf16 %v121_v8, %v119_v7  ;;  %v123_v13 = vld [vmem:[#allocation5 + $0x180] sm:$0xff] }
  0x38   :  { %v538_v12 = vpack.c.bf16 %v126_v10, %v124_v9  ;;  %v125_v14 = vld [vmem:[#allocation5 + $0x190] sm:$0xff]  ;;  %v128_v15 = vld [vmem:[#allocation5 + $0x1a8] sm:$0xff]  ;;  %v130_v16 = vld [vmem:[#allocation5 + $0x1b8] sm:$0xff]  ;;  %v142_v3 = vshrl.u32 %v141_v2, 7 }
  0x39   :  { %v540_v17 = vpack.c.bf16 %v125_v14, %v123_v13  ;;  %v542_v18 = vpack.c.bf16 %v130_v16, %v128_v15  ;;  %v127_v19 = vld [vmem:[#allocation5 + $0x1a0] sm:$0xff]  ;;  %v129_v20 = vld [vmem:[#allocation5 + $0x1b0] sm:$0xff]  ;;  %v132_v21 = vld [vmem:[#allocation5 + $0x1c8] sm:$0xff] }
  0x3a   :  { %509 = vmatpush1.bf16.msra.mxu0 %v508_v31  ;;  %574 = vmatpush1.bf16.msra.mxu1 %v508_v31  ;;  %v134_v22 = vld [vmem:[#allocation5 + $0x1d8] sm:$0xff]  ;;  %v544_v23 = vpack.c.bf16 %v129_v20, %v127_v19  ;;  %v131_v25 = vld [vmem:[#allocation5 + $0x1c0] sm:$0xff]  ;;  %v133_v26 = vld [vmem:[#allocation5 + $0x1d0] sm:$0xff]  ;;  %v143_v4 = vsub.s32 0, %v142_v3 }
  0x3b   :  { %511 = vmatprep.subr.bf16.mxu0 %v510_v32  ;;  %559 = vmatprep.subr.bf16.mxu1 %v510_v32  ;;  %v546_v24 = vpack.c.bf16 %v134_v22, %v132_v21  ;;  %v136_v27 = vld [vmem:[#allocation5 + $0x1e8] sm:$0xff]  ;;  %v138_v28 = vld [vmem:[#allocation5 + $0x1f8] sm:$0xff]  ;;  %v548_v29 = vpack.c.bf16 %v133_v26, %v131_v25  ;;  %v135_v31 = vld [vmem:[#allocation5 + $0x1e0] sm:$0xff] }
  0x3c   :  { %v550_v30 = vpack.c.bf16 %v138_v28, %v136_v27  ;;  %v137_v32 = vld [vmem:[#allocation5 + $0x1f0] sm:$0xff]  ;;  %v724_v34 = vld [vmem:[#allocation2] sm:$0xff]  ;;  %v728_v36 = vld [vmem:[#allocation2 + $0x18] sm:$0xff] }
  0x3d   :  { %v552_v33 = vpack.c.bf16 %v137_v32, %v135_v31  ;;  %v726_v35 = vld [vmem:[#allocation2 + $0x80] sm:$0xff]  ;;  %v736_v38 = vld [vmem:[#allocation2 + $0x10] sm:$0xff]  ;;  %v740_v40 = vld [vmem:[#allocation2 + $0x28] sm:$0xff] }
  0x3e   :  { %513 = vmatpush1.bf16.msra.mxu0 %v512_v37  ;;  %575 = vmatpush1.bf16.msra.mxu1 %v512_v37  ;;  %v730_v37 = vld [vmem:[#allocation2 + $0x98] sm:$0xff]  ;;  %v742_v43 = vld [vmem:[#allocation2 + $0xa8] sm:$0xff]  ;;  %v748_v44 = vld [vmem:[#allocation2 + $0x20] sm:$0xff] }
  0x3f   :  { %515 = vmatprep.subr.bf16.mxu0 %v514_v39  ;;  %560 = vmatprep.subr.bf16.mxu1 %v514_v39  ;;  %v738_v39 = vld [vmem:[#allocation2 + $0x90] sm:$0xff]  ;;  %v754_v47 = vld [vmem:[#allocation2 + $0xb8] sm:$0xff]  ;;  %v764_v50 = vld [vmem:[#allocation2 + $0x48] sm:$0xff] }
  0x40   :  { %v760_v48 = vld [vmem:[#allocation2 + $0x30] sm:$0xff]  ;;  %v774_v53 = vld [vmem:[#allocation2 + $0xc0] sm:$0xff]  ;;  %v776_v54 = vld [vmem:[#allocation2 + $0x58] sm:$0xff] }
  0x41   :  { %v762_v49 = vld [vmem:[#allocation2 + $0xb0] sm:$0xff]  ;;  %v778_v55 = vld [vmem:[#allocation2 + $0xd8] sm:$0xff]  ;;  %v790_v59 = vld [vmem:[#allocation2 + $0xe8] sm:$0xff] }
  0x42   :  { %517 = vmatpush1.bf16.msra.mxu0 %v516_v45  ;;  %576 = vmatpush1.bf16.msra.mxu1 %v516_v45  ;;  %v750_v45 = vld [vmem:[#allocation2 + $0xa0] sm:$0xff]  ;;  %v784_v56 = vld [vmem:[#allocation2 + $0x50] sm:$0xff]  ;;  %v800_v62 = vld [vmem:[#allocation2 + $0x78] sm:$0xff] }
  0x43   :  { %519 = vmatprep.subr.bf16.mxu0 %v518_v46  ;;  %561 = vmatprep.subr.bf16.mxu1 %v518_v46  ;;  %v752_v46 = vld [vmem:[#allocation2 + $0x38] sm:$0xff]  ;;  %v796_v60 = vld [vmem:[#allocation2 + $0x60] sm:$0xff]  ;;  %v810_v1 = vld [vmem:[#allocation2 + $0xf0] sm:$0xff] }
  0x44   :  { %v798_v61 = vld [vmem:[#allocation2 + $0xe0] sm:$0xff] }
  0x46   :  { %521 = vmatpush1.bf16.msra.mxu0 %v520_v51  ;;  %577 = vmatpush1.bf16.msra.mxu1 %v520_v51  ;;  %v766_v51 = vld [vmem:[#allocation2 + $0xc8] sm:$0xff] }
  0x47   :  { %523 = vmatprep.subr.bf16.mxu0 %v522_v52  ;;  %562 = vmatprep.subr.bf16.mxu1 %v522_v52  ;;  %v772_v52 = vld [vmem:[#allocation2 + $0x40] sm:$0xff] }
  0x4a   :  { %525 = vmatpush1.bf16.msra.mxu0 %v524_v57  ;;  %578 = vmatpush1.bf16.msra.mxu1 %v524_v57  ;;  %v786_v57 = vld [vmem:[#allocation2 + $0xd0] sm:$0xff] }
  0x4b   :  { %527 = vmatprep.subr.bf16.mxu0 %v526_v58  ;;  %563 = vmatprep.subr.bf16.mxu1 %v526_v58  ;;  %v788_v58 = vld [vmem:[#allocation2 + $0x68] sm:$0xff] }
  0x4e   :  { %529 = vmatpush1.bf16.msra.mxu0 %v528_v63  ;;  %579 = vmatpush1.bf16.msra.mxu1 %v528_v63  ;;  %v802_v63 = vld [vmem:[#allocation2 + $0xf8] sm:$0xff] }
  0x4f   :  { %531 = vmatprep.subr.bf16.mxu0 %v530_v0  ;;  %564 = vmatprep.subr.bf16.mxu1 %v530_v0  ;;  %v808_v0 = vld [vmem:[#allocation2 + $0x70] sm:$0xff] }
  0x52   :  { %533 = vmatpush1.bf16.msra.mxu0 %v532_v5  ;;  %580 = vmatpush1.bf16.msra.mxu1 %v532_v5  ;;  %v139_v5 = vld [vmem:[%s902_s2] sm:$0x3]  ;;  %s667_s2 = smov [#allocation7]  }
  0x53   :  { %535 = vmatprep.subr.bf16.mxu0 %v534_v6  ;;  %565 = vmatprep.subr.bf16.mxu1 %v534_v6  ;;  %v147_v6 = vsub.s32 1, %v142_v3  ;;  %v817_v7 = vrot.slane %v139_v5, %v143_v4  ;;  %s477_s11 = sshll.u32 %s667_s2, 4  ;;  %s478_s11 = int_to_ptr.vmem [resolvable:$true] %s477_s11 }
  0x54   :  { %s635_s12 = scalar_lea.vmem %s478_s11, 4096  ;;  %p640_p3 = scmp.lt.s32.totalorder %s478_s11, %s478_s11 }
  0x55   :  { %v819_v8 = vrot.slane %v139_v5, %v147_v6  ;;  %p636_p2 = scmp.ne.s32.totalorder %s478_s11, %s635_s12  ;;  %p641_p4 = scmp.lt.s32.totalorder %s635_s12, %s635_s12 }
  0x56   :  { %537 = vmatpush1.bf16.msra.mxu0 %v536_v11  ;;  %581 = vmatpush1.bf16.msra.mxu1 %v536_v11 }
  0x57   :  { %539 = vmatprep.subr.bf16.mxu0 %v538_v12  ;;  %566 = vmatprep.subr.bf16.mxu1 %v538_v12  ;;  %p642_p5 = por %p641_p4, %p640_p3 }
  0x59   :  { %p643_p6 = pnand %p642_p5, %p636_p2 }
  0x5a   :  { %541 = vmatpush1.bf16.msra.mxu0 %v540_v17  ;;  %582 = vmatpush1.bf16.msra.mxu1 %v540_v17 }
  0x5b   :  { %543 = vmatprep.subr.bf16.mxu0 %v542_v18  ;;  %567 = vmatprep.subr.bf16.mxu1 %v542_v18 }
  0x5e   :  { %545 = vmatpush1.bf16.msra.mxu0 %v544_v23  ;;  %583 = vmatpush1.bf16.msra.mxu1 %v544_v23 }
  0x5f   :  { %547 = vmatprep.subr.bf16.mxu0 %v546_v24  ;;  %568 = vmatprep.subr.bf16.mxu1 %v546_v24 }
  0x62   :  { %549 = vmatpush1.bf16.msra.mxu0 %v548_v29  ;;  %584 = vmatpush1.bf16.msra.mxu1 %v548_v29 }
  0x63   :  { %551 = vmatprep.subr.bf16.mxu0 %v550_v30  ;;  %569 = vmatprep.subr.bf16.mxu1 %v550_v30 }
  0x66   :  { %553 = vmatpush1.bf16.msra.mxu0 %v552_v33  ;;  %585 = vmatpush1.bf16.msra.mxu1 %v552_v33 }
  0x69   :  { %216 = vmatmul.mubr.f32.vlgmr.msra.gmra.mrb[0].mxu0 %v724_v34  ;;  %264 = vmatmul.mubr.f32.vlgmr.msra.gmra.mrb[0].mxu1 %v726_v35 }
  0x6a   :  { %221 = vmatprep.mubr.f32.mxu0 %v728_v36  ;;  %269 = vmatprep.mubr.f32.mxu1 %v730_v37 }
  0x6d   :  { %222 = vmatmul.mubr.f32.gmra.mrb[2].mxu0 %v736_v38  ;;  %270 = vmatmul.mubr.f32.gmra.mrb[2].mxu1 %v738_v39 }
  0x6e   :  { %227 = vmatprep.mubr.f32.mxu0 %v740_v40  ;;  %275 = vmatprep.mubr.f32.mxu1 %v742_v43 }
  0x71   :  { %228 = vmatmul.mubr.f32.gmra.mrb[4].mxu0 %v748_v44  ;;  %276 = vmatmul.mubr.f32.gmra.mrb[4].mxu1 %v750_v45 }
  0x72   :  { %233 = vmatprep.mubr.f32.mxu0 %v752_v46  ;;  %281 = vmatprep.mubr.f32.mxu1 %v754_v47 }
  0x75   :  { %234 = vmatmul.mubr.f32.gmra.mrb[6].mxu0 %v760_v48  ;;  %282 = vmatmul.mubr.f32.gmra.mrb[6].mxu1 %v762_v49 }
  0x76   :  { %239 = vmatprep.mubr.f32.mxu0 %v764_v50  ;;  %287 = vmatprep.mubr.f32.mxu1 %v766_v51 }
  0x79   :  { %240 = vmatmul.mubr.f32.gmra.mrb[8].mxu0 %v772_v52  ;;  %288 = vmatmul.mubr.f32.gmra.mrb[8].mxu1 %v774_v53 }
  0x7a   :  { %245 = vmatprep.mubr.f32.mxu0 %v776_v54  ;;  %293 = vmatprep.mubr.f32.mxu1 %v778_v55 }
  0x7d   :  { %246 = vmatmul.mubr.f32.gmra.mrb[10].mxu0 %v784_v56  ;;  %294 = vmatmul.mubr.f32.gmra.mrb[10].mxu1 %v786_v57 }
  0x7e   :  { %251 = vmatprep.mubr.f32.mxu0 %v788_v58  ;;  %299 = vmatprep.mubr.f32.mxu1 %v790_v59 }
  0x81   :  { %252 = vmatmul.mubr.f32.gmra.mrb[12].mxu0 %v796_v60  ;;  %300 = vmatmul.mubr.f32.gmra.mrb[12].mxu1 %v798_v61 }
  0x82   :  { %257 = vmatprep.mubr.f32.mxu0 %v800_v62  ;;  %305 = vmatprep.mubr.f32.mxu1 %v802_v63 }
  0x85   :  { %258 = vmatmul.mubr.f32.gmra.mrb[14].mxu0 %v808_v0  ;;  %306 = vmatmul.mubr.f32.gmra.mrb[14].mxu1 %v810_v1 }
 0x13c   :  { %v217_v9 = vpop.f32.mrb[0].mxu0  ;;  %v265_v10 = vpop.f32.mrb[0].mxu1 }
 0x13d   :  { %v218_v11 = vadd.f32 %v217_v9, %v817_v7  ;;  %v266_v12 = vadd.f32 %v265_v10, %v817_v7  ;;  %v219_v13 = vpop.f32.mrb[1].mxu0  ;;  %v267_v14 = vpop.f32.mrb[1].mxu1 }
 0x13e   :  { %v220_v15 = vadd.f32 %v219_v13, %v819_v8  ;;  %v268_v16 = vadd.f32 %v267_v14, %v819_v8 }
 0x13f   :  { %vm312_vm0 = vcmp.ge.f32.partialorder %v218_v11, 0.0  ;;  %v344_v17 = vmul.f32 0.1, %v218_v11  ;;  %vm328_vm1 = vcmp.ge.f32.partialorder %v266_v12, 0.0  ;;  %v360_v18 = vmul.f32 0.1, %v266_v12 }
 0x140   :  { %vm313_vm2 = vcmp.ge.f32.partialorder %v220_v15, 0.0  ;;  %v345_v19 = vmul.f32 0.1, %v220_v15  ;;  %vm329_vm3 = vcmp.ge.f32.partialorder %v268_v16, 0.0  ;;  %v361_v20 = vmul.f32 0.1, %v268_v16 }
 0x141   :  { %v376_v21 = vsel %vm312_vm0, %v218_v11, %v344_v17  ;;  %v392_v22 = vsel %vm328_vm1, %v266_v12, %v360_v18  ;;  %v223_v23 = vpop.f32.mrb[2].mxu0  ;;  %v271_v24 = vpop.f32.mrb[2].mxu1 }
 0x142   :  { %v408_v25 = vadd.f32 %v376_v21, %v724_v34  ;;  %v424_v26 = vadd.f32 %v392_v22, %v726_v35  ;;  %v377_v27 = vsel %vm313_vm2, %v220_v15, %v345_v19  ;;  %v393_v28 = vsel %vm329_vm3, %v268_v16, %v361_v20  ;;  %v225_v29 = vpop.f32.mrb[3].mxu0  ;;  %v273_v30 = vpop.f32.mrb[3].mxu1 }
 0x143   :  { %v409_v31 = vadd.f32 %v377_v27, %v718_v41  ;;  %v425_v32 = vadd.f32 %v393_v28, %v720_v42  ;;  %v224_v33 = vadd.f32 %v223_v23, %v817_v7  ;;  %v272_v2 = vadd.f32 %v271_v24, %v817_v7 }
 0x144   :  { %440 = vst [vmem:[#allocation7] sm:$0xff] %v408_v25  ;;  %456 = vst [vmem:[#allocation7 + $0x80] sm:$0xff] %v424_v26  ;;  %v226_v3 = vadd.f32 %v225_v29, %v819_v8  ;;  %v274_v34 = vadd.f32 %v273_v30, %v819_v8  ;;  %v229_v4 = vpop.f32.mrb[4].mxu0  ;;  %v277_v35 = vpop.f32.mrb[4].mxu1 }
 0x145   :  { %441 = vst [vmem:[#allocation7 + $0x8] sm:$0xff] %v409_v31  ;;  %457 = vst [vmem:[#allocation7 + $0x88] sm:$0xff] %v425_v32  ;;  %vm314_vm4 = vcmp.ge.f32.partialorder %v224_v33, 0.0  ;;  %v346_v5 = vmul.f32 0.1, %v224_v33  ;;  %vm330_vm5 = vcmp.ge.f32.partialorder %v272_v2, 0.0  ;;  %v230_v11 = vadd.f32 %v229_v4, %v817_v7 }
 0x146   :  { %v362_v41 = vmul.f32 0.1, %v272_v2  ;;  %vm315_vm6 = vcmp.ge.f32.partialorder %v226_v3, 0.0  ;;  %v347_v42 = vmul.f32 0.1, %v226_v3  ;;  %vm331_vm7 = vcmp.ge.f32.partialorder %v274_v34, 0.0 }
 0x147   :  { %v363_v6 = vmul.f32 0.1, %v274_v34  ;;  %v378_v9 = vsel %vm314_vm4, %v224_v33, %v346_v5  ;;  %v278_v12 = vadd.f32 %v277_v35, %v817_v7  ;;  %v231_v13 = vpop.f32.mrb[5].mxu0  ;;  %v279_v14 = vpop.f32.mrb[5].mxu1  ;;  %vm316_vm8 = vcmp.ge.f32.partialorder %v230_v11, 0.0 }
 0x148   :  { %v394_v10 = vsel %vm330_vm5, %v272_v2, %v362_v41  ;;  %v410_v15 = vadd.f32 %v378_v9, %v736_v38  ;;  %v379_v17 = vsel %vm315_vm6, %v226_v3, %v347_v42  ;;  %v235_v19 = vpop.f32.mrb[6].mxu0  ;;  %v283_v20 = vpop.f32.mrb[6].mxu1  ;;  %v348_v23 = vmul.f32 0.1, %v230_v11 }
 0x149   :  { %v426_v16 = vadd.f32 %v394_v10, %v738_v39  ;;  %v395_v18 = vsel %vm331_vm7, %v274_v34, %v363_v6  ;;  %v411_v21 = vadd.f32 %v379_v17, %v728_v36  ;;  %v237_v24 = vpop.f32.mrb[7].mxu0  ;;  %v285_v25 = vpop.f32.mrb[7].mxu1  ;;  %vm332_vm9 = vcmp.ge.f32.partialorder %v278_v12, 0.0 }
 0x14a   :  { %v427_v22 = vadd.f32 %v395_v18, %v730_v37  ;;  %442 = vst [vmem:[#allocation7 + $0x10] sm:$0xff] %v410_v15  ;;  %v364_v26 = vmul.f32 0.1, %v278_v12  ;;  %v232_v38 = vadd.f32 %v231_v13, %v819_v8  ;;  %v280_v39 = vadd.f32 %v279_v14, %v819_v8 }
 0x14b   :  { %458 = vst [vmem:[#allocation7 + $0x90] sm:$0xff] %v426_v16  ;;  %443 = vst [vmem:[#allocation7 + $0x18] sm:$0xff] %v411_v21  ;;  %v380_v27 = vsel %vm316_vm8, %v230_v11, %v348_v23  ;;  %v236_v28 = vadd.f32 %v235_v19, %v817_v7  ;;  %v284_v36 = vadd.f32 %v283_v20, %v817_v7 }
 0x14c   :  { %459 = vst [vmem:[#allocation7 + $0x98] sm:$0xff] %v427_v22  ;;  %v238_v37 = vadd.f32 %v237_v24, %v819_v8  ;;  %v412_v29 = vadd.f32 %v380_v27, %v748_v44  ;;  %v396_v30 = vsel %vm332_vm9, %v278_v12, %v364_v26  ;;  %vm317_vm10 = vcmp.ge.f32.partialorder %v232_v38, 0.0  ;;  %v241_v32 = vpop.f32.mrb[8].mxu0  ;;  %v289_v33 = vpop.f32.mrb[8].mxu1 }
 0x14d   :  { %v349_v31 = vmul.f32 0.1, %v232_v38  ;;  %v428_v2 = vadd.f32 %v396_v30, %v750_v45  ;;  %vm333_vm11 = vcmp.ge.f32.partialorder %v280_v39, 0.0  ;;  %v365_v3 = vmul.f32 0.1, %v280_v39  ;;  %v243_v34 = vpop.f32.mrb[9].mxu0 }
 0x14e   :  { %vm318_vm12 = vcmp.ge.f32.partialorder %v236_v28, 0.0  ;;  %v291_v4 = vpop.f32.mrb[9].mxu1  ;;  %444 = vst [vmem:[#allocation7 + $0x20] sm:$0xff] %v412_v29  ;;  %v350_v5 = vmul.f32 0.1, %v236_v28  ;;  %vm334_vm13 = vcmp.ge.f32.partialorder %v284_v36, 0.0  ;;  %v286_v11 = vadd.f32 %v285_v25, %v819_v8 }
 0x14f   :  { %v381_v35 = vsel %vm317_vm10, %v232_v38, %v349_v31  ;;  %v366_v41 = vmul.f32 0.1, %v284_v36  ;;  %460 = vst [vmem:[#allocation7 + $0xa0] sm:$0xff] %v428_v2  ;;  %v397_v42 = vsel %vm333_vm11, %v280_v39, %v365_v3  ;;  %vm319_vm14 = vcmp.ge.f32.partialorder %v238_v37, 0.0 }
 0x150   :  { %v413_v44 = vadd.f32 %v381_v35, %v740_v40  ;;  %v351_v6 = vmul.f32 0.1, %v238_v37  ;;  %v429_v9 = vadd.f32 %v397_v42, %v742_v43  ;;  %v382_v10 = vsel %vm318_vm12, %v236_v28, %v350_v5  ;;  %v247_v12 = vpop.f32.mrb[10].mxu0  ;;  %v295_v13 = vpop.f32.mrb[10].mxu1 }
 0x151   :  { %v398_v45 = vsel %vm334_vm13, %v284_v36, %v366_v41  ;;  %v414_v14 = vadd.f32 %v382_v10, %v760_v48  ;;  %v242_v17 = vadd.f32 %v241_v32, %v817_v7  ;;  %v249_v40 = vpop.f32.mrb[11].mxu0  ;;  %v297_v18 = vpop.f32.mrb[11].mxu1  ;;  %vm335_vm15 = vcmp.ge.f32.partialorder %v286_v11, 0.0 }
 0x152   :  { %445 = vst [vmem:[#allocation7 + $0x28] sm:$0xff] %v413_v44  ;;  %v430_v15 = vadd.f32 %v398_v45, %v762_v49  ;;  %v383_v16 = vsel %vm319_vm14, %v238_v37, %v351_v6  ;;  %461 = vst [vmem:[#allocation7 + $0xa8] sm:$0xff] %v429_v9  ;;  %v367_v43 = vmul.f32 0.1, %v286_v11  ;;  %v290_v20 = vadd.f32 %v289_v33, %v817_v7 }
 0x153   :  { %v415_v19 = vadd.f32 %v383_v16, %v752_v46  ;;  %446 = vst [vmem:[#allocation7 + $0x30] sm:$0xff] %v414_v14  ;;  %vm320_vm0 = vcmp.ge.f32.partialorder %v242_v17, 0.0  ;;  %v352_v21 = vmul.f32 0.1, %v242_v17  ;;  %v244_v48 = vadd.f32 %v243_v34, %v819_v8 }
 0x154   :  { %462 = vst [vmem:[#allocation7 + $0xb0] sm:$0xff] %v430_v15  ;;  %v292_v49 = vadd.f32 %v291_v4, %v819_v8  ;;  %v399_v22 = vsel %vm335_vm15, %v286_v11, %v367_v43  ;;  %vm336_vm1 = vcmp.ge.f32.partialorder %v290_v20, 0.0  ;;  %v368_v23 = vmul.f32 0.1, %v290_v20  ;;  %v253_v25 = vpop.f32.mrb[12].mxu0  ;;  %v301_v46 = vpop.f32.mrb[12].mxu1 }
 0x155   :  { %447 = vst [vmem:[#allocation7 + $0x38] sm:$0xff] %v415_v19  ;;  %v248_v24 = vadd.f32 %v247_v12, %v817_v7  ;;  %v431_v26 = vadd.f32 %v399_v22, %v754_v47  ;;  %v384_v38 = vsel %vm320_vm0, %v242_v17, %v352_v21  ;;  %vm321_vm2 = vcmp.ge.f32.partialorder %v244_v48, 0.0  ;;  %v255_v27 = vpop.f32.mrb[13].mxu0  ;;  %v303_v28 = vpop.f32.mrb[13].mxu1 }
 0x156   :  { %v353_v39 = vmul.f32 0.1, %v244_v48  ;;  %v416_v36 = vadd.f32 %v384_v38, %v772_v52  ;;  %v400_v37 = vsel %vm336_vm1, %v290_v20, %v368_v23  ;;  %vm337_vm3 = vcmp.ge.f32.partialorder %v292_v49, 0.0 }
 0x157   :  { %v369_v29 = vmul.f32 0.1, %v292_v49  ;;  %463 = vst [vmem:[#allocation7 + $0xb8] sm:$0xff] %v431_v26  ;;  %v432_v30 = vadd.f32 %v400_v37, %v774_v53  ;;  %vm322_vm4 = vcmp.ge.f32.partialorder %v248_v24, 0.0  ;;  %v354_v32 = vmul.f32 0.1, %v248_v24 }
 0x158   :  { %v385_v31 = vsel %vm321_vm2, %v244_v48, %v353_v39  ;;  %448 = vst [vmem:[#allocation7 + $0x40] sm:$0xff] %v416_v36  ;;  %v296_v2 = vadd.f32 %v295_v13, %v817_v7  ;;  %v250_v3 = vadd.f32 %v249_v40, %v819_v8  ;;  %v259_v34 = vpop.f32.mrb[14].mxu0  ;;  %v307_v4 = vpop.f32.mrb[14].mxu1  ;;  %v298_v5 = vadd.f32 %v297_v18, %v819_v8 }
 0x159   :  { %v417_v33 = vadd.f32 %v385_v31, %v764_v50  ;;  %v401_v47 = vsel %vm337_vm3, %v292_v49, %v369_v29  ;;  %464 = vst [vmem:[#allocation7 + $0xc0] sm:$0xff] %v432_v30  ;;  %v386_v35 = vsel %vm322_vm4, %v248_v24, %v354_v32  ;;  %v254_v53 = vadd.f32 %v253_v25, %v817_v7  ;;  %v261_v41 = vpop.f32.mrb[15].mxu0  ;;  %v309_v44 = vpop.f32.mrb[15].mxu1 }
 0x15a   :  { %v433_v52 = vadd.f32 %v401_v47, %v766_v51  ;;  %v418_v50 = vadd.f32 %v386_v35, %v784_v56  ;;  %vm338_vm5 = vcmp.ge.f32.partialorder %v296_v2, 0.0  ;;  %v370_v42 = vmul.f32 0.1, %v296_v2 }
 0x15b   :  { %449 = vst [vmem:[#allocation7 + $0x48] sm:$0xff] %v417_v33  ;;  %vm323_vm6 = vcmp.ge.f32.partialorder %v250_v3, 0.0  ;;  %v355_v6 = vmul.f32 0.1, %v250_v3  ;;  %vm339_vm7 = vcmp.ge.f32.partialorder %v298_v5, 0.0  ;;  %vm324_vm8 = vcmp.ge.f32.partialorder %v254_v53, 0.0 }
 0x15c   :  { %465 = vst [vmem:[#allocation7 + $0xc8] sm:$0xff] %v433_v52  ;;  %v371_v9 = vmul.f32 0.1, %v298_v5  ;;  %450 = vst [vmem:[#allocation7 + $0x50] sm:$0xff] %v418_v50  ;;  %v402_v51 = vsel %vm338_vm5, %v296_v2, %v370_v42  ;;  %v356_v10 = vmul.f32 0.1, %v254_v53  ;;  %v302_v45 = vadd.f32 %v301_v46, %v817_v7 }
 0x15d   :  { %v256_v11 = vadd.f32 %v255_v27, %v819_v8  ;;  %v434_v12 = vadd.f32 %v402_v51, %v786_v57  ;;  %v387_v13 = vsel %vm323_vm6, %v250_v3, %v355_v6  ;;  %v304_v56 = vadd.f32 %v303_v28, %v819_v8 }
 0x15e   :  { %v403_v14 = vsel %vm339_vm7, %v298_v5, %v371_v9  ;;  %v419_v15 = vadd.f32 %v387_v13, %v776_v54  ;;  %v388_v17 = vsel %vm324_vm8, %v254_v53, %v356_v10  ;;  %vm340_vm9 = vcmp.ge.f32.partialorder %v302_v45, 0.0 }
 0x15f   :  { %v435_v16 = vadd.f32 %v403_v14, %v778_v55  ;;  %466 = vst [vmem:[#allocation7 + $0xd0] sm:$0xff] %v434_v12  ;;  %v420_v40 = vadd.f32 %v388_v17, %v796_v60  ;;  %v372_v18 = vmul.f32 0.1, %v302_v45  ;;  %vm325_vm10 = vcmp.ge.f32.partialorder %v256_v11, 0.0 }
 0x160   :  { %v357_v19 = vmul.f32 0.1, %v256_v11  ;;  %451 = vst [vmem:[#allocation7 + $0x58] sm:$0xff] %v419_v15  ;;  %vm341_vm11 = vcmp.ge.f32.partialorder %v304_v56, 0.0  ;;  %v373_v57 = vmul.f32 0.1, %v304_v56  ;;  %v260_v43 = vadd.f32 %v259_v34, %v817_v7 }
 0x161   :  { %467 = vst [vmem:[#allocation7 + $0xd8] sm:$0xff] %v435_v16  ;;  %v308_v20 = vadd.f32 %v307_v4, %v817_v7  ;;  %452 = vst [vmem:[#allocation7 + $0x60] sm:$0xff] %v420_v40  ;;  %v404_v54 = vsel %vm340_vm9, %v302_v45, %v372_v18  ;;  %v262_v55 = vadd.f32 %v261_v41, %v819_v8 }
 0x162   :  { %v389_v21 = vsel %vm325_vm10, %v256_v11, %v357_v19  ;;  %v310_v48 = vadd.f32 %v309_v44, %v819_v8  ;;  %v436_v60 = vadd.f32 %v404_v54, %v798_v61  ;;  %v405_v22 = vsel %vm341_vm11, %v304_v56, %v373_v57 }
 0x163   :  { %v421_v49 = vadd.f32 %v389_v21, %v788_v58  ;;  %vm326_vm12 = vcmp.ge.f32.partialorder %v260_v43, 0.0  ;;  %v437_v23 = vadd.f32 %v405_v22, %v790_v59  ;;  %v358_v24 = vmul.f32 0.1, %v260_v43 }
 0x164   :  { %vm342_vm13 = vcmp.ge.f32.partialorder %v308_v20, 0.0  ;;  %v374_v25 = vmul.f32 0.1, %v308_v20  ;;  %468 = vst [vmem:[#allocation7 + $0xe0] sm:$0xff] %v436_v60  ;;  %vm327_vm14 = vcmp.ge.f32.partialorder %v262_v55, 0.0  ;;  %vm343_vm15 = vcmp.ge.f32.partialorder %v310_v48, 0.0 }
 0x165   :  { %453 = vst [vmem:[#allocation7 + $0x68] sm:$0xff] %v421_v49  ;;  %v359_v7 = vmul.f32 0.1, %v262_v55  ;;  %v375_v46 = vmul.f32 0.1, %v310_v48  ;;  %469 = vst [vmem:[#allocation7 + $0xe8] sm:$0xff] %v437_v23  ;;  %v390_v8 = vsel %vm326_vm12, %v260_v43, %v358_v24 }
 0x166   :  { %v406_v61 = vsel %vm342_vm13, %v308_v20, %v374_v25  ;;  %v422_v58 = vadd.f32 %v390_v8, %v808_v0 }
 0x167   :  { %v438_v26 = vadd.f32 %v406_v61, %v810_v1  ;;  %v391_v38 = vsel %vm327_vm14, %v262_v55, %v359_v7  ;;  %v407_v59 = vsel %vm343_vm15, %v310_v48, %v375_v46 }
 0x168   :  { %v423_v39 = vadd.f32 %v391_v38, %v800_v62  ;;  %v439_v27 = vadd.f32 %v407_v59, %v802_v63  ;;  %454 = vst [vmem:[#allocation7 + $0x70] sm:$0xff] %v422_v58 }
 0x169   :  { %470 = vst [vmem:[#allocation7 + $0xf0] sm:$0xff] %v438_v26 }
 0x16a   :  { %455 = vst [vmem:[#allocation7 + $0x78] sm:$0xff] %v423_v39  ;;  %471 = vst [vmem:[#allocation7 + $0xf8] sm:$0xff] %v439_v27 }
 0x16b   :  { %646 = shalt.err (!%p643_p6)
}
 0x16c   :  { %s647_s15 = scalar_lea.hbm %s903_s3, 4096 }
 0x16d   :  { %p648_p7 = scmp.ne.s32.totalorder %s903_s3, %s647_s15  ;;  %p651_p8 = scmp.lt.u32.totalorder %s647_s15, %s903_s3 }
 0x16f   :  { %p653_p9 = pnand %p651_p8, %p648_p7 }
 0x171   :  { %656 = shalt.err (!%p653_p9)
}
 0x172   :  { %483 = dma.vmem_to_hbm [thread:$0]  %s478_s11, 4096, %s903_s3, [#allocation4], %s664_s22, %s664_s22, %s665_s23  }
 0x173   :  { %661 = dma.done.wait [#allocation4], 4096  }
 0x174   :  { %662 = vsyncadd [#allocation4], 4294963200 }
 0x175   :  { %487 = vsyncpa [#allocation3], 1 }
 0x176   :  { %488 = vsyncpa [#allocation6], 1 }
 0x177   :  { %489 = vsyncpa [#allocation4], 1 }

</bundles_post_ra>
